<compile_context>
chip_gen: v6e
topology: v6e:2x2x1
jax: 0.10.0
libtpu: 0.0.40
codegen_flags: <defaults>
</compile_context>

<pallas_src>
import functools
import math

import jax
import jax.numpy as jnp
from jax.experimental import pallas as pl
from jax.experimental.pallas import tpu as pltpu


# ------------------------------ tiling plan ---------------------------------

_LANE = 128
_SUBLANE = 8
_TILE_N = 512                   # candidate-axis tile (lanes); shrunk if VMEM-tight
_MAX_BT = 256                   # batch-axis tile cap (rows)
_VMEM_STEP_BUDGET = 16 << 20    # accounted bytes/step (incl. 2x buffering + f32 temps)
_VMEM_LIMIT_BYTES = 32 << 20    # explicit scoped-VMEM cap (safe on v5e/v6e/v7x)
_F32_TEMPS = 3                  # assumed live (bt, tn, d_max) f32 compute temporaries


def _round_up(x, m):
    return ((x + m - 1) // m) * m


def _pad_axis(x, axis, target):
    if x.shape[axis] == target:
        return x
    pad = [(0, 0)] * x.ndim
    pad[axis] = (0, target - x.shape[axis])
    return jnp.pad(x, pad)


def _plan_tiles(b, n, input_specs):
    """Pick (bt, tn, b_pad, n_pad).

    input_specs: list of (is_n_sized, d, itemsize) for each kernel input.
    Accounting includes Pallas double-buffering and the in-kernel f32 upcast
    temporaries, so the per-step footprint stays under _VMEM_STEP_BUDGET and
    therefore well inside _VMEM_LIMIT_BYTES on every TPU generation.
    """
    n128 = _round_up(max(n, 1), _LANE)
    d_max = max(d for _, d, _ in input_specs)

    def step_bytes(bt, tn):
        total = 0
        for is_n, d, isz in input_specs:
            nb = tn if is_n else 1
            total += 2 * bt * nb * d * isz            # double-buffered input block
        total += 2 * bt * tn * 4                      # double-buffered f32 output block
        total += _F32_TEMPS * bt * tn * d_max * 4     # live f32 compute temporaries
        return total

    # Candidate-axis tile: start wide, shrink (128-lane granularity) until a
    # minimal 8-row batch tile fits the budget -- no silent budget overruns.
    tn = min(_TILE_N, n128)
    while tn > _LANE and step_bytes(_SUBLANE, tn) > _VMEM_STEP_BUDGET:
        tn = max(_LANE, ((tn // 2) // _LANE) * _LANE)

    # Batch-axis tile: largest multiple of 8 rows that fits (or the whole batch).
    bt = max(1, _VMEM_STEP_BUDGET // max(step_bytes(1, tn), 1))
    bt = min(bt, _MAX_BT)
    if bt >= b:
        bt, b_pad = b, b                              # one tile spans the batch
    else:
        bt = max(_SUBLANE, (bt // _SUBLANE) * _SUBLANE)
        b_pad = _round_up(b, bt)

    # Megacore (v7x has 2 TCs): when the batch collapses to one tile, make sure
    # the candidate axis provides >= 2 grid steps if it is wide enough.
    if b_pad == bt and n128 == tn and n128 >= 2 * _LANE:
        tn = _LANE * ((n128 // _LANE + 1) // 2)

    n_pad = _round_up(n128, tn)
    return bt, tn, b_pad, n_pad


# ------------------------------ Pallas kernels ------------------------------

def _transe_kernel(head_ref, rel_ref, tail_ref, out_ref, *, gamma, head_batch):
    # f32 in-flight math on bf16-stored embeddings (reference parity at 1e-4).
    h = head_ref[...].astype(jnp.float32)     # (bt, nh, d)
    r = rel_ref[...].astype(jnp.float32)      # (bt, nr, d)
    t = tail_ref[...].astype(jnp.float32)     # (bt, nt, d)
    if head_batch:
        s = h + (r - t)                       # torch parenthesization (head-batch)
    else:
        s = (h + r) - t
    out_ref[...] = gamma - jnp.sum(jnp.abs(s), axis=2)      # (bt, tn) lane-dense


def _rotate_fused_kernel(head_ref, re_r_ref, im_r_ref, tail_ref, out_ref,
                         *, gamma, head_batch, dh):
    # dh % 128 == 0: re/im split is a 128-aligned lane slice inside the kernel,
    # so the wrapper never materializes split copies of the big tensors.
    h = head_ref[...].astype(jnp.float32)     # (bt, nh, 2*dh)
    t = tail_ref[...].astype(jnp.float32)     # (bt, nt, 2*dh)
    re_h, im_h = h[..., :dh], h[..., dh:]
    re_t, im_t = t[..., :dh], t[..., dh:]
    re_r = re_r_ref[...].astype(jnp.float32)  # cos(phase), precomputed in wrapper
    im_r = im_r_ref[...].astype(jnp.float32)  # sin(phase), precomputed in wrapper
    if head_batch:
        re_s = re_r * re_t + im_r * im_t - re_h
        im_s = re_r * im_t - im_r * re_t - im_h
    else:
        re_s = re_h * re_r - im_h * im_r - re_t
        im_s = re_h * im_r + im_h * re_r - im_t
    mag = jnp.sqrt(re_s * re_s + im_s * im_s)
    out_ref[...] = gamma - jnp.sum(mag, axis=2)              # (bt, tn) lane-dense


def _rotate_split_kernel(re_h_ref, im_h_ref, re_r_ref, im_r_ref, re_t_ref,
                         im_t_ref, out_ref, *, gamma, head_batch):
    # Fallback for dh not a multiple of 128: re/im already split in the wrapper
    # so the kernel never slices the lane axis at a non-128 boundary.
    re_h = re_h_ref[...].astype(jnp.float32)
    im_h = im_h_ref[...].astype(jnp.float32)
    re_r = re_r_ref[...].astype(jnp.float32)
    im_r = im_r_ref[...].astype(jnp.float32)
    re_t = re_t_ref[...].astype(jnp.float32)
    im_t = im_t_ref[...].astype(jnp.float32)
    if head_batch:
        re_s = re_r * re_t + im_r * im_t - re_h
        im_s = re_r * im_t - im_r * re_t - im_h
    else:
        re_s = re_h * re_r - im_h * im_r - re_t
        im_s = re_h * im_r + im_h * re_r - im_t
    mag = jnp.sqrt(re_s * re_s + im_s * im_s)
    out_ref[...] = gamma - jnp.sum(mag, axis=2)              # (bt, tn) lane-dense


# --------------------------- pallas_call wrapper ----------------------------

def _score_pallas(kernel, inputs, plan):
    """Run a (bt, tn, d)-tiled elementwise scoring kernel.

    inputs: (b_pad, n_i, d_i) arrays with n_i in {1, n_pad}, already padded via
    the *index* arrays (no jnp.pad of the gathered embedding tensors).
    Returns the full (b_pad, n_pad) f32 score array; caller slices the valid part.
    """
    bt, tn, b_pad, n_pad = plan
    assert all(x.shape[0] == b_pad for x in inputs), [x.shape for x in inputs]
    assert all(x.shape[1] in (1, n_pad) for x in inputs), [x.shape for x in inputs]

    in_specs = []
    for x in inputs:
        d = x.shape[2]
        if x.shape[1] == 1:
            # Broadcast operand: block index constant across the inner grid axis
            # -> DMA'd once per batch tile, not re-fetched per candidate tile.
            in_specs.append(pl.BlockSpec((bt, 1, d), lambda i, j: (i, 0, 0)))
        else:
            in_specs.append(pl.BlockSpec((bt, tn, d), lambda i, j: (i, j, 0)))

    return pl.pallas_call(
        kernel,
        out_shape=jax.ShapeDtypeStruct((b_pad, n_pad), jnp.float32),
        grid=(b_pad // bt, n_pad // tn),              # candidate axis innermost
        in_specs=in_specs,
        out_specs=pl.BlockSpec((bt, tn), lambda i, j: (i, j)),
        compiler_params=pltpu.CompilerParams(
            dimension_semantics=("parallel", "parallel"),
            vmem_limit_bytes=_VMEM_LIMIT_BYTES),
    )(*inputs)


# ------------------------------ Model wrapper --------------------------------

class KGEModelPallas:
    def __init__(self, model_name, nentity, nrelation, hidden_dim, gamma,
                 triplere_u, double_entity_embedding=False,
                 double_relation_embedding=False, key=None,
                 param_dtype=jnp.bfloat16):
        if model_name not in ["TransE", "RotatE"]:
            raise ValueError("model %s not supported" % model_name)
        if model_name == "RotatE" and (not double_entity_embedding
                                       or double_relation_embedding):
            raise ValueError("RotatE should use --double_entity_embedding")

        self.model_name = model_name
        self.nentity = nentity
        self.nrelation = nrelation
        self.hidden_dim = hidden_dim
        self.epsilon = 2.0
        self.u = triplere_u
        self.gamma = float(gamma)
        self.embedding_range = (self.gamma + self.epsilon) / hidden_dim
        self.entity_dim = hidden_dim * 2 if double_entity_embedding else hidden_dim
        self.relation_dim = hidden_dim * 2 if double_relation_embedding else hidden_dim

        if key is None:
            key = jax.random.PRNGKey(0)
        k1, k2 = jax.random.split(key)
        # Stored in bf16: the kernel (and the reference) upcast to f32 in-flight.
        self.entity_embedding = jax.random.uniform(
            k1, (nentity, self.entity_dim), dtype=jnp.float32,
            minval=-self.embedding_range, maxval=self.embedding_range
        ).astype(param_dtype)
        self.relation_embedding = jax.random.uniform(
            k2, (nrelation, self.relation_dim), dtype=jnp.float32,
            minval=-self.embedding_range, maxval=self.embedding_range
        ).astype(param_dtype)

    # ---- relation phases (shared by kernel path and reference) ----
    def _rotate_phases(self, relation):
        phase = relation.astype(jnp.float32) / (self.embedding_range / math.pi)
        # Cast cos/sin to the storage dtype (bf16): halves their DMA.
        re_r = jnp.cos(phase).astype(relation.dtype)
        im_r = jnp.sin(phase).astype(relation.dtype)
        return re_r, im_r

    # ---- Pallas scoring dispatch ----
    def _score(self, head, relation, tail, head_batch, plan):
        if self.model_name == "TransE":
            kern = functools.partial(_transe_kernel, gamma=self.gamma,
                                     head_batch=head_batch)
            return _score_pallas(kern, [head, relation, tail], plan)
        # RotatE
        dh = self.relation_dim
        re_r, im_r = self._rotate_phases(relation)
        if dh % _LANE == 0:
            kern = functools.partial(_rotate_fused_kernel, gamma=self.gamma,
                                     head_batch=head_batch, dh=dh)
            return _score_pallas(kern, [head, re_r, im_r, tail], plan)
        # Small / unaligned dh (e.g. the demo's 32): split in the wrapper.
        re_h, im_h = head[..., :dh], head[..., dh:]
        re_t, im_t = tail[..., :dh], tail[..., dh:]
        kern = functools.partial(_rotate_split_kernel, gamma=self.gamma,
                                 head_batch=head_batch)
        return _score_pallas(kern, [re_h, im_h, re_r, im_r, re_t, im_t], plan)

    # ---- forward: index-pad -> gather -> Pallas score ----
    def forward(self, sample, mode="single"):
        ent, rel = self.entity_embedding, self.relation_embedding
        isz = jnp.dtype(ent.dtype).itemsize
        de, dr = self.entity_dim, self.relation_dim

        if mode == "single":
            b = sample.shape[0]
            # Fold the batch onto the candidate/lane axis -> lane-dense output row(s).
            plan = _plan_tiles(1, b, [(True, de, isz), (True, dr, isz), (True, de, isz)])
            n_pad = plan[3]
            idx = _pad_axis(sample, 0, n_pad)          # pad cheap int32 indices, not embeddings
            head = ent[idx[:, 0]][None, :, :]          # (1, n_pad, de)
            relation = rel[idx[:, 1]][None, :, :]      # (1, n_pad, dr)
            tail = ent[idx[:, 2]][None, :, :]          # (1, n_pad, de)
            score = self._score(head, relation, tail, head_batch=False, plan=plan)
            return score[:1, :b].reshape(b, 1)

        if mode == "head-batch":
            pos_part, neg_part = sample                # (tail_part, head_part)
        elif mode == "tail-batch":
            pos_part, neg_part = sample                # (head_part, tail_part)
        else:
            raise ValueError("mode %s not supported" % mode)

        b, nneg = neg_part.shape
        head_batch = mode == "head-batch"
        plan = _plan_tiles(
            b, nneg,
            [(head_batch, de, isz), (False, dr, isz), (not head_batch, de, isz)])
        _, _, b_pad, n_pad = plan
        # Pad the index arrays before the gather; the gathered tensors then come
        # out at the padded shapes with zero extra HBM traffic for the big array.
        pos_p = _pad_axis(pos_part, 0, b_pad)
        neg_p = _pad_axis(_pad_axis(neg_part, 1, n_pad), 0, b_pad)
        if head_batch:
            head = ent[neg_p]                          # (b_pad, n_pad, de)
            relation = rel[pos_p[:, 1]][:, None, :]    # (b_pad, 1, dr)
            tail = ent[pos_p[:, 2]][:, None, :]        # (b_pad, 1, de)
        else:
            head = ent[pos_p[:, 0]][:, None, :]
            relation = rel[pos_p[:, 1]][:, None, :]
            tail = ent[neg_p]
        score = self._score(head, relation, tail, head_batch=head_batch, plan=plan)
        return score[:b, :nneg]

    # ---- Pure-JAX reference (mirrors the PyTorch math) for verification ----
    def forward_ref(self, sample, mode="single"):
        ent, rel = self.entity_embedding, self.relation_embedding
        if mode == "single":
            head = ent[sample[:, 0]][:, None, :]
            relation = rel[sample[:, 1]][:, None, :]
            tail = ent[sample[:, 2]][:, None, :]
        elif mode == "head-batch":
            pos_part, neg_part = sample
            b, nneg = neg_part.shape
            head = ent[neg_part.reshape(-1)].reshape(b, nneg, -1)
            relation = rel[pos_part[:, 1]][:, None, :]
            tail = ent[pos_part[:, 2]][:, None, :]
        elif mode == "tail-batch":
            pos_part, neg_part = sample
            b, nneg = neg_part.shape
            head = ent[pos_part[:, 0]][:, None, :]
            relation = rel[pos_part[:, 1]][:, None, :]
            tail = ent[neg_part.reshape(-1)].reshape(b, nneg, -1)
        else:
            raise ValueError("mode %s not supported" % mode)

        head_batch = mode == "head-batch"
        if self.model_name == "TransE":
            h = head.astype(jnp.float32)
            r = relation.astype(jnp.float32)
            t = tail.astype(jnp.float32)
            if head_batch:
                s = h + (r - t)
            else:
                s = (h + r) - t
            return self.gamma - jnp.sum(jnp.abs(s), axis=2)

        # RotatE
        dh = self.relation_dim
        re_r, im_r = self._rotate_phases(relation)
        re_r = re_r.astype(jnp.float32)
        im_r = im_r.astype(jnp.float32)
        re_h = head[..., :dh].astype(jnp.float32)
        im_h = head[..., dh:].astype(jnp.float32)
        re_t = tail[..., :dh].astype(jnp.float32)
        im_t = tail[..., dh:].astype(jnp.float32)
        if head_batch:
            re_s = re_r * re_t + im_r * im_t - re_h
            im_s = re_r * im_t - im_r * re_t - im_h
        else:
            re_s = re_h * re_r - im_h * im_r - re_t
            im_s = re_h * im_r + im_h * re_r - im_t
        mag = jnp.sqrt(re_s * re_s + im_s * im_s)
        return self.gamma - jnp.sum(mag, axis=2)


# ---------------------------------- main --------------------------------------

if __name__ == "__main__":
    key = jax.random.PRNGKey(0)
    k_model_a, k_model_b, k_model_c, k_idx = jax.random.split(key, 4)

    nentity, nrelation, hidden_dim, gamma = 64, 16, 32, 12.0
    batch, neg = 2, 8

    def make_samples(k, b, n):
        k1, k2, k3, k4 = jax.random.split(k, 4)
        heads = jax.random.randint(k1, (b, 1), 0, nentity)
        rels = jax.random.randint(k2, (b, 1), 0, nrelation)
        tails = jax.random.randint(k3, (b, 1), 0, nentity)
        pos = jnp.concatenate([heads, rels, tails], axis=1).astype(jnp.int32)
        negs = jax.random.randint(k4, (b, n), 0, nentity).astype(jnp.int32)
        return pos, negs

    positive_sample, negative_sample = make_samples(k_idx, batch, neg)
    pos_big, neg_big = make_samples(jax.random.fold_in(k_idx, 1), 4, 300)
    pos_wide, _ = make_samples(jax.random.fold_in(k_idx, 2), 200, 1)

    # TransE: single entity/relation dims.
    transe = KGEModelPallas("TransE", nentity, nrelation, hidden_dim, gamma,
                            triplere_u=1.0, key=k_model_a)
    # RotatE with small hidden_dim (wrapper re/im split path).
    rotate = KGEModelPallas("RotatE", nentity, nrelation, hidden_dim, gamma,
                            triplere_u=1.0, double_entity_embedding=True,
                            key=k_model_b)
    # RotatE with 128-aligned hidden_dim (fused in-kernel re/im split path).
    rotate_big = KGEModelPallas("RotatE", nentity, nrelation, 128, gamma,
                                triplere_u=1.0, double_entity_embedding=True,
                                key=k_model_c)

    checks = [
        (transe, positive_sample, "single"),
        (transe, (positive_sample, negative_sample), "head-batch"),
        (transe, (positive_sample, negative_sample), "tail-batch"),
        (rotate, positive_sample, "single"),
        (rotate, (positive_sample, negative_sample), "head-batch"),
        (rotate, (positive_sample, negative_sample), "tail-batch"),
        # Larger shapes: exercise candidate-axis tiling / megacore split paths.
        (transe, (pos_big, neg_big), "tail-batch"),
        (rotate_big, (pos_big, neg_big), "head-batch"),
        (transe, pos_wide, "single"),
    ]

    for model, sample, mode in checks:
        out = model.forward(sample, mode=mode)
        jax.block_until_ready(out)
        ref = model.forward_ref(sample, mode=mode)
        assert out.shape == ref.shape, (out.shape, ref.shape)
        assert jnp.allclose(out, ref, atol=1e-4, rtol=1e-4), (
            model.model_name, mode, float(jnp.max(jnp.abs(out - ref))))

    print("KERNEL_OK")
</pallas_src>

<mosaic_0001>
module attributes {stable_mosaic.version = 11 : i64} {
  func.func @_transe_kernel(%arg0: i32, %arg1: i32, %arg2: memref<1x128x32xbf16, #tpu.memory_space<vmem>>, %arg3: memref<1x128x32xbf16, #tpu.memory_space<vmem>>, %arg4: memref<1x128x32xbf16, #tpu.memory_space<vmem>>, %arg5: memref<1x128xf32, #tpu.memory_space<vmem>>) attributes {dimension_semantics = [#tpu.dimension_semantics<parallel>, #tpu.dimension_semantics<parallel>], iteration_bounds = array<i64: 1, 1>, scalar_prefetch = 0 : i64, scratch_operands = 0 : i64, tpu.core_type = #tpu.core_type<tc>, window_params = [{transform_indices = @transform_0, window_bounds = array<i64: 1, 128, 32>}, {transform_indices = @transform_1, window_bounds = array<i64: 1, 128, 32>}, {transform_indices = @transform_2, window_bounds = array<i64: 1, 128, 32>}, {transform_indices = @transform_3, window_bounds = array<i64: 1, 128>}]} {
    %c0 = arith.constant 0 : index
    %c0_0 = arith.constant 0 : index
    %c0_1 = arith.constant 0 : index
    %0 = vector.load %arg2[%c0, %c0_0, %c0_1] : memref<1x128x32xbf16, #tpu.memory_space<vmem>>, vector<1x128x32xbf16>
    %1 = arith.extf %0 : vector<1x128x32xbf16> to vector<1x128x32xf32>
    %c0_2 = arith.constant 0 : index
    %c0_3 = arith.constant 0 : index
    %c0_4 = arith.constant 0 : index
    %2 = vector.load %arg3[%c0_2, %c0_3, %c0_4] : memref<1x128x32xbf16, #tpu.memory_space<vmem>>, vector<1x128x32xbf16>
    %3 = arith.extf %2 : vector<1x128x32xbf16> to vector<1x128x32xf32>
    %c0_5 = arith.constant 0 : index
    %c0_6 = arith.constant 0 : index
    %c0_7 = arith.constant 0 : index
    %4 = vector.load %arg4[%c0_5, %c0_6, %c0_7] : memref<1x128x32xbf16, #tpu.memory_space<vmem>>, vector<1x128x32xbf16>
    %5 = arith.extf %4 : vector<1x128x32xbf16> to vector<1x128x32xf32>
    %6 = arith.addf %1, %3 : vector<1x128x32xf32>
    %7 = arith.subf %6, %5 : vector<1x128x32xf32>
    %8 = math.absf %7 : vector<1x128x32xf32>
    %cst = arith.constant dense<0.000000e+00> : vector<1x128xf32>
    %9 = vector.multi_reduction <add>, %8, %cst [2] : vector<1x128x32xf32> to vector<1x128xf32>
    %cst_8 = arith.constant 1.200000e+01 : f32
    %10 = vector.broadcast %cst_8 : f32 to vector<1x128xf32>
    %11 = arith.subf %10, %9 : vector<1x128xf32>
    %c0_9 = arith.constant 0 : index
    %c0_10 = arith.constant 0 : index
    %12 = vector.load %arg5[%c0_9, %c0_10] : memref<1x128xf32, #tpu.memory_space<vmem>>, vector<1x128xf32>
    tpu.vector_store %arg5[%c0_9, %c0_10], %11 {strides = array<i32>} : memref<1x128xf32, #tpu.memory_space<vmem>>, vector<1x128xf32>,
    return
  }
  func.func @transform_0(%arg0: i32, %arg1: i32) -> (i32, i32, i32) {
    %c0_i32 = arith.constant 0 : i32
    %c0_i32_0 = arith.constant 0 : i32
    return %arg0, %arg1, %c0_i32 : i32, i32, i32
  }
  func.func @transform_1(%arg0: i32, %arg1: i32) -> (i32, i32, i32) {
    %c0_i32 = arith.constant 0 : i32
    %c0_i32_0 = arith.constant 0 : i32
    return %arg0, %arg1, %c0_i32 : i32, i32, i32
  }
  func.func @transform_2(%arg0: i32, %arg1: i32) -> (i32, i32, i32) {
    %c0_i32 = arith.constant 0 : i32
    %c0_i32_0 = arith.constant 0 : i32
    return %arg0, %arg1, %c0_i32 : i32, i32, i32
  }
  func.func @transform_3(%arg0: i32, %arg1: i32) -> (i32, i32) {
    %c0_i32 = arith.constant 0 : i32
    return %arg0, %arg1 : i32, i32
  }
}

</mosaic_0001>

<bundles_post_ra>
// kernel: tpu_custom_call.1
= control target key start
LH: loop header
LB: loop body
LE: loop exit
PB: predicated region body
PF: predicated region fallthrough
CT: control target
= control target key end

     0   :  { %vm159_vm0 = vcmask 261120   ;;  %s656_s0 = inlined_call_operand.vmem [shape: bf16[1,128,32], index: 0, kind: input, shape index: {}]   ;;  %s657_s1 = inlined_call_operand.vmem [shape: bf16[1,128,32], index: 1, kind: input, shape index: {}]   ;;  %s658_s2 = inlined_call_operand.vmem [shape: bf16[1,128,32], index: 2, kind: input, shape index: {}]   ;;  %s659_s3 = inlined_call_operand.hbm [shape: f32[1,128], index: 3, kind: output, shape index: {}]  }
   0x1   :  { %v368_v0 = vld [vmem:[%s656_s0] sm:$0xff]   ;;  %v463_v6 = vld [vmem:[%s656_s0 + $0x8] sm:$0xff]   ;;  %v464_v14 = vld [vmem:[%s656_s0 + $0x10] sm:$0xff]  }
   0x2   :  { %v400_v1 = vld [vmem:[%s657_s1] sm:$0xff]   ;;  %v369_v3 = vunpack.c.l.bf16 %v368_v0  ;;  %v470_v7 = vld [vmem:[%s657_s1 + $0x8] sm:$0xff]   ;;  %v370_v9 = vunpack.c.h.bf16 %v368_v0  ;;  %v373_v10 = vunpack.c.l.bf16 %v463_v6  ;;  %v471_v15 = vld [vmem:[%s657_s1 + $0x10] sm:$0xff]   ;;  %v374_v19 = vunpack.c.h.bf16 %v463_v6 }
   0x3   :  { %v432_v2 = vld [vmem:[%s658_s2] sm:$0xff]   ;;  %v401_v4 = vunpack.c.l.bf16 %v400_v1  ;;  %v477_v8 = vld [vmem:[%s658_s2 + $0x8] sm:$0xff]   ;;  %v405_v11 = vunpack.c.l.bf16 %v470_v7  ;;  %v402_v13 = vunpack.c.h.bf16 %v400_v1  ;;  %v478_v16 = vld [vmem:[%s658_s2 + $0x10] sm:$0xff]   ;;  %v406_v20 = vunpack.c.h.bf16 %v470_v7 }
   0x4   :  { %v433_v5 = vunpack.c.l.bf16 %v432_v2  ;;  %v437_v12 = vunpack.c.l.bf16 %v477_v8  ;;  %v434_v18 = vunpack.c.h.bf16 %v432_v2  ;;  %v438_v23 = vunpack.c.h.bf16 %v477_v8  ;;  %v465_v29 = vld [vmem:[%s656_s0 + $0x18] sm:$0xff]  }
   0x5   :  { %v111_v17 = vadd.f32 %v401_v4, %v369_v3  ;;  %v113_v21 = vadd.f32 %v405_v11, %v373_v10  ;;  %v112_v22 = vadd.f32 %v402_v13, %v370_v9  ;;  %v377_v24 = vunpack.c.l.bf16 %v464_v14  ;;  %v472_v34 = vld [vmem:[%s657_s1 + $0x18] sm:$0xff]  }
   0x6   :  { %v114_v26 = vadd.f32 %v406_v20, %v374_v19  ;;  %v409_v27 = vunpack.c.l.bf16 %v471_v15  ;;  %v441_v28 = vunpack.c.l.bf16 %v478_v16  ;;  %v378_v32 = vunpack.c.h.bf16 %v464_v14  ;;  %v479_v39 = vld [vmem:[%s658_s2 + $0x18] sm:$0xff]  }
   0x7   :  { %v127_v25 = vsub.f32 %v111_v17, %v433_v5  ;;  %v129_v30 = vsub.f32 %v113_v21, %v437_v12  ;;  %v128_v31 = vsub.f32 %v112_v22, %v434_v18  ;;  %v410_v33 = vunpack.c.h.bf16 %v471_v15 }
   0x8   :  { %v130_v36 = vsub.f32 %v114_v26, %v438_v23  ;;  %v115_v37 = vadd.f32 %v409_v27, %v377_v24  ;;  %v442_v38 = vunpack.c.h.bf16 %v478_v16  ;;  %v381_v43 = vunpack.c.l.bf16 %v465_v29 }
   0x9   :  { %v143_v35 = vand.u32 2147483647, %v127_v25  ;;  %v145_v40 = vand.u32 2147483647, %v129_v30  ;;  %v144_v41 = vand.u32 2147483647, %v128_v31  ;;  %v116_v42 = vadd.f32 %v410_v33, %v378_v32 }
   0xa   :  { %8 = vsyncpa [#allocation3], 0  ;;  %v146_v45 = vand.u32 2147483647, %v130_v36  ;;  %v131_v46 = vsub.f32 %v115_v37, %v441_v28  ;;  %v413_v47 = vunpack.c.l.bf16 %v472_v34  ;;  %v466_v48 = vld [vmem:[%s656_s0 + $0x20] sm:$0xff]   ;;  %v445_v52 = vunpack.c.l.bf16 %v479_v39  ;;  %v467_v63 = vld [vmem:[%s656_s0 + $0x28] sm:$0xff]  }
   0xb   :  { %v160_v44 = vsel %vm159_vm0, %v143_v35, 0.0  ;;  %v166_v49 = vsel %vm159_vm0, %v145_v40, 0.0  ;;  %v163_v50 = vsel %vm159_vm0, %v144_v41, 0.0  ;;  %v132_v51 = vsub.f32 %v116_v42, %v442_v38  ;;  %v473_v53 = vld [vmem:[%s657_s1 + $0x20] sm:$0xff]   ;;  %v474_v4 = vld [vmem:[%s657_s1 + $0x28] sm:$0xff]   ;;  %v468_v18 = vld [vmem:[%s656_s0 + $0x30] sm:$0xff]  }
   0xc   :  { %161 = vadd.xlane.f32.xlu0 %v160_v44  ;;  %v480_v54 = vld [vmem:[%s658_s2 + $0x20] sm:$0xff]   ;;  %167 = vadd.xlane.f32.xlu1 %v166_v49  ;;  %v169_v55 = vsel %vm159_vm0, %v146_v45, 0.0  ;;  %v147_v56 = vand.u32 2147483647, %v131_v46  ;;  %v117_v57 = vadd.f32 %v413_v47, %v381_v43  ;;  %v382_v58 = vunpack.c.h.bf16 %v465_v29  ;;  %v481_v5 = vld [vmem:[%s658_s2 + $0x28] sm:$0xff]   ;;  %v475_v19 = vld [vmem:[%s657_s1 + $0x30] sm:$0xff]  }
   0xd   :  { %v148_v59 = vand.u32 2147483647, %v132_v51  ;;  %v414_v60 = vunpack.c.h.bf16 %v472_v34  ;;  %v446_v61 = vunpack.c.h.bf16 %v479_v39  ;;  %v385_v62 = vunpack.c.l.bf16 %v466_v48  ;;  %v482_v24 = vld [vmem:[%s658_s2 + $0x30] sm:$0xff]   ;;  %v469_v37 = vld [vmem:[%s656_s0 + $0x38] sm:$0xff]   ;;  %s507_s0 = smov [#allocation2]  }
   0xe   :  { %v172_v0 = vsel %vm159_vm0, %v147_v56, 0.0  ;;  %v133_v1 = vsub.f32 %v117_v57, %v445_v52  ;;  %v417_v2 = vunpack.c.l.bf16 %v473_v53  ;;  %v449_v3 = vunpack.c.l.bf16 %v480_v54  ;;  %v476_v38 = vld [vmem:[%s657_s1 + $0x38] sm:$0xff]   ;;  %s359_s1 = sshll.u32 %s507_s0, 4  ;;  %s360_s1 = int_to_ptr.vmem [resolvable:$true] %s359_s1 }
   0xf   :  { %v175_v6 = vsel %vm159_vm0, %v148_v59, 0.0  ;;  %v118_v7 = vadd.f32 %v414_v60, %v382_v58  ;;  %v386_v8 = vunpack.c.h.bf16 %v466_v48  ;;  %v418_v9 = vunpack.c.h.bf16 %v473_v53  ;;  %v483_v42 = vld [vmem:[%s658_s2 + $0x38] sm:$0xff]   ;;  %s485_s2 = scalar_lea.vmem %s360_s1, 16  ;;  %s489_s6 = scalar_lea.vmem %s360_s1, 32 }
  0x10   :  { %164 = vadd.xlane.f32.xlu0 %v163_v50  ;;  %170 = vadd.xlane.f32.xlu1 %v169_v55  ;;  %v149_v10 = vand.u32 2147483647, %v133_v1  ;;  %v119_v11 = vadd.f32 %v417_v2, %v385_v62  ;;  %v450_v12 = vunpack.c.h.bf16 %v480_v54  ;;  %v389_v13 = vunpack.c.l.bf16 %v467_v63  ;;  %p486_p0 = scmp.ne.s32.totalorder %s360_s1, %s485_s2  ;;  %p490_p1 = scmp.lt.s32.totalorder %s360_s1, %s360_s1 }
  0x11   :  { %v134_v14 = vsub.f32 %v118_v7, %v446_v61  ;;  %v120_v15 = vadd.f32 %v418_v9, %v386_v8  ;;  %v421_v16 = vunpack.c.l.bf16 %v474_v4  ;;  %v453_v17 = vunpack.c.l.bf16 %v481_v5  ;;  %p491_p2 = scmp.lt.s32.totalorder %s489_s6, %s485_s2 }
  0x12   :  { %v178_v20 = vsel %vm159_vm0, %v149_v10, 0.0  ;;  %v135_v21 = vsub.f32 %v119_v11, %v449_v3  ;;  %v390_v22 = vunpack.c.h.bf16 %v467_v63  ;;  %v422_v23 = vunpack.c.h.bf16 %v474_v4 }
  0x13   :  { %v150_v25 = vand.u32 2147483647, %v134_v14  ;;  %v136_v26 = vsub.f32 %v120_v15, %v450_v12  ;;  %v121_v27 = vadd.f32 %v421_v16, %v389_v13  ;;  %v454_v28 = vunpack.c.h.bf16 %v481_v5  ;;  %p492_p3 = por %p491_p2, %p490_p1 }
  0x14   :  { %173 = vadd.xlane.f32.xlu0 %v172_v0  ;;  %176 = vadd.xlane.f32.xlu1 %v175_v6  ;;  %v151_v29 = vand.u32 2147483647, %v135_v21  ;;  %v122_v30 = vadd.f32 %v422_v23, %v390_v22  ;;  %v393_v31 = vunpack.c.l.bf16 %v468_v18  ;;  %v425_v32 = vunpack.c.l.bf16 %v475_v19 }
  0x15   :  { %v181_v33 = vsel %vm159_vm0, %v150_v25, 0.0  ;;  %v152_v34 = vand.u32 2147483647, %v136_v26  ;;  %v137_v35 = vsub.f32 %v121_v27, %v453_v17  ;;  %v457_v36 = vunpack.c.l.bf16 %v482_v24  ;;  %p493_p4 = pnand %p492_p3, %p486_p0 }
  0x16   :  { %v138_v39 = vsub.f32 %v122_v30, %v454_v28  ;;  %v123_v40 = vadd.f32 %v425_v32, %v393_v31  ;;  %v394_v41 = vunpack.c.h.bf16 %v468_v18  ;;  %v184_v43 = vsel %vm159_vm0, %v151_v29, 0.0 }
  0x17   :  { %v187_v44 = vsel %vm159_vm0, %v152_v34, 0.0  ;;  %v426_v45 = vunpack.c.h.bf16 %v475_v19  ;;  %v458_v46 = vunpack.c.h.bf16 %v482_v24  ;;  %v153_v47 = vand.u32 2147483647, %v137_v35 }
  0x18   :  { %179 = vadd.xlane.f32.xlu0 %v178_v20  ;;  %182 = vadd.xlane.f32.xlu1 %v181_v33  ;;  %v139_v48 = vsub.f32 %v123_v40, %v457_v36  ;;  %v397_v49 = vunpack.c.l.bf16 %v469_v37  ;;  %v429_v50 = vunpack.c.l.bf16 %v476_v38  ;;  %v154_v51 = vand.u32 2147483647, %v138_v39 }
  0x19   :  { %v124_v52 = vadd.f32 %v426_v45, %v394_v41  ;;  %v461_v53 = vunpack.c.l.bf16 %v483_v42  ;;  %v398_v54 = vunpack.c.h.bf16 %v469_v37  ;;  %v430_v56 = vunpack.c.h.bf16 %v476_v38 }
  0x1a   :  { %v125_v55 = vadd.f32 %v429_v50, %v397_v49  ;;  %v462_v58 = vunpack.c.h.bf16 %v483_v42  ;;  %v190_v59 = vsel %vm159_vm0, %v153_v47, 0.0  ;;  %v155_v60 = vand.u32 2147483647, %v139_v48 }
  0x1b   :  { %v140_v57 = vsub.f32 %v124_v52, %v458_v46  ;;  %v126_v62 = vadd.f32 %v430_v56, %v398_v54  ;;  %v193_v63 = vsel %vm159_vm0, %v154_v51, 0.0  ;;  %v240_v8 = vlaneseq }
  0x1c   :  { %185 = vadd.xlane.f32.xlu0 %v184_v43  ;;  %188 = vadd.xlane.f32.xlu1 %v187_v44  ;;  %v141_v61 = vsub.f32 %v125_v55, %v461_v53  ;;  %v196_v2 = vsel %vm159_vm0, %v155_v60, 0.0  ;;  %vm251_vm1 = vcmask 130112   ;;  %vm258_vm2 = vcmask 195712  }
  0x1d   :  { %v156_v0 = vand.u32 2147483647, %v140_v57  ;;  %v142_v1 = vsub.f32 %v126_v62, %v462_v58  ;;  %v616_v9 = vand.u32 127, %v240_v8  ;;  %v618_v10 = vshrl.u32 %v240_v8, 7 }
  0x1e   :  { %v157_v3 = vand.u32 2147483647, %v141_v61  ;;  %vm265_vm3 = vcmask 261312   ;;  %vm272_vm4 = vcmask 326912   ;;  %vm279_vm5 = vcmask 392512  }
  0x1f   :  { %v199_v4 = vsel %vm159_vm0, %v156_v0, 0.0  ;;  %v158_v5 = vand.u32 2147483647, %v142_v1  ;;  %v246_v11 = vadd.s32 4294967288, %v616_v9  ;;  %v253_v13 = vadd.s32 4294967280, %v616_v9 }
  0x20   :  { %191 = vadd.xlane.f32.xlu0 %v190_v59  ;;  %194 = vadd.xlane.f32.xlu1 %v193_v63  ;;  %v202_v6 = vsel %vm159_vm0, %v157_v3, 0.0  ;;  %v260_v14 = vadd.s32 4294967272, %v616_v9  ;;  %v244_v16 = vsub.s32 %v616_v9, %v618_v10  ;;  %v267_v19 = vadd.s32 4294967264, %v616_v9 }
  0x21   :  { %v205_v7 = vsel %vm159_vm0, %v158_v5, 0.0  ;;  %v249_v18 = vsub.s32 %v246_v11, %v618_v10  ;;  %v256_v20 = vsub.s32 %v253_v13, %v618_v10  ;;  %v274_v24 = vadd.s32 4294967256, %v616_v9 }
  0x22   :  { %v263_v23 = vsub.s32 %v260_v14, %v618_v10  ;;  %v270_v30 = vsub.s32 %v267_v19, %v618_v10  ;;  %v281_v31 = vadd.s32 4294967248, %v616_v9  ;;  %v288_v36 = vadd.s32 4294967240, %v616_v9 }
  0x23   :  { %v277_v35 = vsub.s32 %v274_v24, %v618_v10  ;;  %v295_v45 = vadd.s32 4294967232, %v616_v9  ;;  %v302_v49 = vadd.s32 4294967224, %v616_v9  ;;  %vm286_vm6 = vcmask 458112  }
  0x24   :  { %197 = vadd.xlane.f32.xlu0 %v196_v2  ;;  %200 = vadd.xlane.f32.xlu1 %v199_v4  ;;  %v284_v44 = vsub.s32 %v281_v31, %v618_v10  ;;  %v291_v48 = vsub.s32 %v288_v36, %v618_v10  ;;  %v309_v56 = vadd.s32 4294967216, %v616_v9  ;;  %v316_v61 = vadd.s32 4294967208, %v616_v9 }
  0x25   :  { %v298_v55 = vsub.s32 %v295_v45, %v618_v10  ;;  %v305_v60 = vsub.s32 %v302_v49, %v618_v10  ;;  %vm293_vm7 = vcmask 523712   ;;  %vm300_vm8 = vcmask 589312  }
  0x26   :  { %v312_v3 = vsub.s32 %v309_v56, %v618_v10  ;;  %v323_v4 = vadd.s32 4294967200, %v616_v9  ;;  %v319_v8 = vsub.s32 %v316_v61, %v618_v10  ;;  %v330_v11 = vadd.s32 4294967192, %v616_v9 }
  0x27   :  { %vm307_vm9 = vcmask 654912   ;;  %vm314_vm10 = vcmask 720512   ;;  %vm321_vm11 = vcmask 786112   ;;  %vm328_vm12 = vcmask 851712  }
  0x28   :  { %203 = vadd.xlane.f32.xlu0 %v202_v6  ;;  %206 = vadd.xlane.f32.xlu1 %v205_v7  ;;  %vm335_vm13 = vcmask 917312   ;;  %vm342_vm14 = vcmask 982912   ;;  %vm349_vm15 = vcmask 1048512  }
  0x95   :  { %v162_v12 = vpop.xlane.xlu0 %161  ;;  %v168_v15 = vpop.xlane.xlu1 %167 }
  0x96   :  { %v208_v17 = vsub.f32 12.0, %v162_v12  ;;  %v210_v21 = vsub.f32 12.0, %v168_v15 }
  0x98   :  { %v245_v28 = vrot.slane %v208_v17, %v244_v16  ;;  %v257_v32 = vrot.slane %v210_v21, %v256_v20  ;;  %v326_v17 = vsub.s32 %v323_v4, %v618_v10 }
  0x99   :  { %v165_v22 = vpop.xlane.xlu0 %164  ;;  %v171_v26 = vpop.xlane.xlu1 %170 }
  0x9a   :  { %v209_v25 = vsub.f32 12.0, %v165_v22  ;;  %v211_v27 = vsub.f32 12.0, %v171_v26  ;;  %v333_v22 = vsub.s32 %v330_v11, %v618_v10 }
  0x9c   :  { %v250_v29 = vrot.slane %v209_v25, %v249_v18  ;;  %v264_v33 = vrot.slane %v211_v27, %v263_v23  ;;  %v337_v18 = vadd.s32 4294967184, %v616_v9  ;;  %v344_v23 = vadd.s32 4294967176, %v616_v9 }
  0x9d   :  { %v174_v34 = vpop.xlane.xlu0 %173  ;;  %v177_v39 = vpop.xlane.xlu1 %176 }
  0x9e   :  { %v252_v37 = vsel %vm251_vm1, %v250_v29, %v245_v28  ;;  %v212_v38 = vsub.f32 12.0, %v174_v34  ;;  %v213_v41 = vsub.f32 12.0, %v177_v39  ;;  %v340_v29 = vsub.s32 %v337_v18, %v618_v10 }
  0x9f   :  { %v259_v40 = vsel %vm258_vm2, %v257_v32, %v252_v37 }
  0xa0   :  { %v266_v42 = vsel %vm265_vm3, %v264_v33, %v259_v40  ;;  %v271_v43 = vrot.slane %v212_v38, %v270_v30  ;;  %v278_v46 = vrot.slane %v213_v41, %v277_v35  ;;  %v347_v33 = vsub.s32 %v344_v23, %v618_v10 }
  0xa1   :  { %v180_v47 = vpop.xlane.xlu0 %179  ;;  %v183_v52 = vpop.xlane.xlu1 %182 }
  0xa2   :  { %v273_v50 = vsel %vm272_vm4, %v271_v43, %v266_v42  ;;  %v214_v51 = vsub.f32 12.0, %v180_v47  ;;  %v215_v53 = vsub.f32 12.0, %v183_v52 }
  0xa3   :  { %v280_v57 = vsel %vm279_vm5, %v278_v46, %v273_v50 }
  0xa4   :  { %v285_v54 = vrot.slane %v214_v51, %v284_v44  ;;  %v292_v58 = vrot.slane %v215_v53, %v291_v48 }
  0xa5   :  { %v186_v59 = vpop.xlane.xlu0 %185  ;;  %v189_v0 = vpop.xlane.xlu1 %188 }
  0xa6   :  { %v287_v62 = vsel %vm286_vm6, %v285_v54, %v280_v57  ;;  %v216_v63 = vsub.f32 12.0, %v186_v59  ;;  %v217_v1 = vsub.f32 12.0, %v189_v0 }
  0xa7   :  { %v294_v5 = vsel %vm293_vm7, %v292_v58, %v287_v62 }
  0xa8   :  { %v299_v2 = vrot.slane %v216_v63, %v298_v55  ;;  %v306_v6 = vrot.slane %v217_v1, %v305_v60 }
  0xa9   :  { %v192_v7 = vpop.xlane.xlu0 %191  ;;  %v195_v14 = vpop.xlane.xlu1 %194 }
  0xaa   :  { %v301_v12 = vsel %vm300_vm8, %v299_v2, %v294_v5  ;;  %v218_v13 = vsub.f32 12.0, %v192_v7  ;;  %v219_v15 = vsub.f32 12.0, %v195_v14 }
  0xab   :  { %v308_v19 = vsel %vm307_vm9, %v306_v6, %v301_v12 }
  0xac   :  { %v313_v16 = vrot.slane %v218_v13, %v312_v3  ;;  %v320_v20 = vrot.slane %v219_v15, %v319_v8 }
  0xad   :  { %v198_v21 = vpop.xlane.xlu0 %197  ;;  %v201_v26 = vpop.xlane.xlu1 %200 }
  0xae   :  { %v315_v24 = vsel %vm314_vm10, %v313_v16, %v308_v19  ;;  %v220_v25 = vsub.f32 12.0, %v198_v21  ;;  %v221_v27 = vsub.f32 12.0, %v201_v26 }
  0xaf   :  { %v322_v30 = vsel %vm321_vm11, %v320_v20, %v315_v24 }
  0xb0   :  { %v327_v28 = vrot.slane %v220_v25, %v326_v17  ;;  %v334_v31 = vrot.slane %v221_v27, %v333_v22 }
  0xb1   :  { %v204_v32 = vpop.xlane.xlu0 %203  ;;  %v207_v36 = vpop.xlane.xlu1 %206 }
  0xb2   :  { %v329_v34 = vsel %vm328_vm12, %v327_v28, %v322_v30  ;;  %v222_v35 = vsub.f32 12.0, %v204_v32  ;;  %v223_v37 = vsub.f32 12.0, %v207_v36 }
  0xb3   :  { %v336_v39 = vsel %vm335_vm13, %v334_v31, %v329_v34 }
  0xb4   :  { %v341_v9 = vrot.slane %v222_v35, %v340_v29  ;;  %v348_v38 = vrot.slane %v223_v37, %v347_v33 }
  0xb6   :  { %v343_v40 = vsel %vm342_vm14, %v341_v9, %v336_v39 }
  0xb7   :  { %v350_v41 = vsel %vm349_vm15, %v348_v38, %v343_v40 }
  0xb8   :  { %352 = vst [vmem:[#allocation2] sm:$0x1] %v350_v41 }
  0xb9   :  { %496 = shalt.err (!%p493_p4)
}
  0xba   :  { %362 = dma.vmem_to_hbm [thread:$0]  %s360_s1, 16, %s659_s3, [#allocation3]  }
  0xbb   :  { %505 = dma.done.wait [#allocation3], 16  }
  0xbc   :  { %506 = vsyncadd [#allocation3], 4294967280 }
  0xbd   :  { %366 = vsyncpa [#allocation3], 1 }

</bundles_post_ra>
